<compile_context>
chip_gen: v7x
topology: tpu7x:2x2x1
jax: 0.10.0
libtpu: 0.0.40
codegen_flags: <defaults>
</compile_context>

<pallas_src>
import functools

import jax
import jax.numpy as jnp
from jax import lax
from jax.experimental import pallas as pl
from jax.experimental.pallas import tpu as pltpu


def _round_up(n, m):
    return ((n + m - 1) // m) * m


def _dynnet_kernel(x_ref, w1_ref, b1_ref, w2_ref, b2_ref, w3_ref, b3_ref,
                   o_ref, *, chunk, n_chunks):
    """Fused MLP over one (bm, Din) batch tile, chunked along the batch rows."""

    def compute(row0):
        xb = x_ref[pl.ds(row0, chunk), :].astype(jnp.bfloat16)          # (c, Din)
        h1 = jnp.dot(xb, w1_ref[...], preferred_element_type=jnp.float32)
        h1 = jnp.maximum(h1 + b1_ref[...], 0.0)                         # (c, H) f32
        h2 = jnp.dot(h1.astype(jnp.bfloat16), w2_ref[...],
                     preferred_element_type=jnp.float32)
        h2 = jnp.maximum(h2 + b2_ref[...], 0.0)                         # (c, H) f32
        y = jnp.dot(h2.astype(jnp.bfloat16), w3_ref[...],
                    preferred_element_type=jnp.float32)                 # (c, Dout)
        o_ref[pl.ds(row0, chunk), :] = (y + b3_ref[...]).astype(o_ref.dtype)

    if n_chunks == 1:
        compute(0)
    else:
        def body(c, carry):
            compute(pl.multiple_of(c * chunk, chunk))
            return carry
        lax.fori_loop(0, n_chunks, body, 0, unroll=True)


def dynnet_forward(x, params, *, block_m=8192):
    """x: (B, 6) float32.  params: PyTorch-layout weights:
       w1 (H,6), b1 (H,), w2 (H,H), b2 (H,), w3 (4,H), b3 (4,)."""
    B, Din = x.shape
    H = params["w1"].shape[0]
    Dout = params["w3"].shape[0]

    # Batch lives on the sublane axis (natural layout).  Chunk the in-kernel
    # compute at 256 rows; pick a tile that is a multiple of the chunk and
    # gives >= 2 grid steps on large batches (v7x dual-TC).
    CHUNK = 256
    if B <= CHUNK:
        bm, chunk = max(B, 1), max(B, 1)           # single step, single chunk
    else:
        chunk = CHUNK
        bm_cap = max(chunk, (B // 2 // chunk) * chunk)
        bm = max(chunk, min(_round_up(block_m, chunk), bm_cap))
    n_chunks = bm // chunk
    grid = pl.cdiv(B, bm)                           # boundary block is masked

    # Tiny weights: pre-transpose to (in, out) and cast to bf16 once so every
    # matmul is a plain single-pass MXU dot; biases stay f32 for the VPU adds.
    w1t = params["w1"].T.astype(jnp.bfloat16)       # (Din, H)
    w2t = params["w2"].T.astype(jnp.bfloat16)       # (H, H)
    w3t = params["w3"].T.astype(jnp.bfloat16)       # (H, Dout)
    b1r = params["b1"].reshape(1, H).astype(jnp.float32)
    b2r = params["b2"].reshape(1, H).astype(jnp.float32)
    b3r = params["b3"].reshape(1, Dout).astype(jnp.float32)

    # Constant index maps keep the params VMEM-resident across grid steps.
    full = lambda shape: pl.BlockSpec(shape, lambda i: (0, 0))

    flops = 2 * B * (Din * H + H * H + H * Dout)
    bytes_accessed = (4 * B * (Din + Dout)
                      + 2 * (Din * H + H * H + H * Dout)
                      + 4 * (2 * H + Dout))
    cost = pl.CostEstimate(flops=flops, transcendentals=0,
                           bytes_accessed=bytes_accessed)

    # (bm, Din)/(bm, Dout) VMEM buffers are lane-padded to 128; budget them
    # explicitly (v5e scoped default is 16 MiB) with headroom, below v7x 64 MiB.
    io_vmem = 2 * 2 * bm * 128 * 4
    vmem_limit = int(min(100 * 1024 * 1024,
                         max(32 * 1024 * 1024, io_vmem + (8 << 20))))

    kernel = functools.partial(_dynnet_kernel, chunk=chunk, n_chunks=n_chunks)

    return pl.pallas_call(
        kernel,
        out_shape=jax.ShapeDtypeStruct((B, Dout), jnp.float32),
        grid_spec=pltpu.PrefetchScalarGridSpec(
            num_scalar_prefetch=0,
            grid=(grid,),
            in_specs=[
                pl.BlockSpec((bm, Din), lambda i: (i, 0)),   # x, natural layout
                full((Din, H)),                              # w1^T (bf16)
                full((1, H)),                                # b1
                full((H, H)),                                # w2^T (bf16)
                full((1, H)),                                # b2
                full((H, Dout)),                             # w3^T (bf16)
                full((1, Dout)),                             # b3
            ],
            out_specs=pl.BlockSpec((bm, Dout), lambda i: (i, 0)),
        ),
        compiler_params=pltpu.CompilerParams(
            dimension_semantics=("parallel",),
            vmem_limit_bytes=vmem_limit,
        ),
        cost_estimate=cost,
    )(x, w1t, b1r, w2t, b2r, w3t, b3r)


def init_params(key, hidden_dim=32):
    """PyTorch nn.Linear default init: U(-1/sqrt(fan_in), 1/sqrt(fan_in))."""
    def linear(key, fan_in, fan_out):
        kw, kb = jax.random.split(key)
        bound = 1.0 / jnp.sqrt(jnp.float32(fan_in))
        w = jax.random.uniform(kw, (fan_out, fan_in), jnp.float32, -bound, bound)
        b = jax.random.uniform(kb, (fan_out,), jnp.float32, -bound, bound)
        return w, b

    k1, k2, k3 = jax.random.split(key, 3)
    w1, b1 = linear(k1, 6, hidden_dim)
    w2, b2 = linear(k2, hidden_dim, hidden_dim)
    w3, b3 = linear(k3, hidden_dim, 4)
    return {"w1": w1, "b1": b1, "w2": w2, "b2": b2, "w3": w3, "b3": b3}


def reference_forward(x, p, matmul_dtype=jnp.float32):
    def dense(a, w, b):
        y = jnp.dot(a.astype(matmul_dtype), w.T.astype(matmul_dtype),
                    preferred_element_type=jnp.float32)
        return y + b.astype(jnp.float32)

    h1 = jnp.maximum(dense(x, p["w1"], p["b1"]), 0.0)
    h2 = jnp.maximum(dense(h1, p["w2"], p["b2"]), 0.0)
    return dense(h2, p["w3"], p["b3"])


if __name__ == "__main__":
    key = jax.random.PRNGKey(0)
    kx, kp = jax.random.split(key)

    batch, hidden = 16, 32
    x = jax.random.normal(kx, (batch, 6), jnp.float32)
    params = init_params(kp, hidden_dim=hidden)

    out = jax.block_until_ready(dynnet_forward(x, params))   # tiny: one grid step
    assert out.shape == (batch, 4)

    # Kernel uses bf16 MXU operands with f32 accumulation: compare tightly
    # against a bf16-operand reference, loosely against the pure-f32 reference.
    ref_bf16 = reference_forward(x, params, matmul_dtype=jnp.bfloat16)
    ref_f32 = reference_forward(x, params, matmul_dtype=jnp.float32)
    assert jnp.allclose(out, ref_bf16, atol=1e-3, rtol=1e-3), "mismatch (bf16 ref)"
    assert jnp.allclose(out, ref_f32, atol=5e-2, rtol=5e-2), "mismatch (f32 ref)"

    # Multi-tile path: ragged batch (masked boundary block), several grid steps,
    # several in-kernel 256-row chunks.
    xb = jax.random.normal(kx, (5000, 6), jnp.float32)
    outb = jax.block_until_ready(dynnet_forward(xb, params, block_m=2048))
    assert outb.shape == (5000, 4)
    assert jnp.allclose(outb, reference_forward(xb, params, jnp.bfloat16),
                        atol=1e-3, rtol=1e-3), "mismatch (large batch)"

    print("KERNEL_OK")
</pallas_src>

<mosaic_0001>
module attributes {stable_mosaic.version = 11 : i64} {
  func.func @_dynnet_kernel(%arg0: i32, %arg1: memref<16x6xf32, #tpu.memory_space<vmem>>, %arg2: memref<6x32xbf16, #tpu.memory_space<vmem>>, %arg3: memref<1x32xf32, #tpu.memory_space<vmem>>, %arg4: memref<32x32xbf16, #tpu.memory_space<vmem>>, %arg5: memref<1x32xf32, #tpu.memory_space<vmem>>, %arg6: memref<32x4xbf16, #tpu.memory_space<vmem>>, %arg7: memref<1x4xf32, #tpu.memory_space<vmem>>, %arg8: memref<16x4xf32, #tpu.memory_space<vmem>>) attributes {dimension_semantics = [#tpu.dimension_semantics<parallel>], iteration_bounds = array<i64: 1>, scalar_prefetch = 0 : i64, scratch_operands = 0 : i64, tpu.core_type = #tpu.core_type<tc>, window_params = [{transform_indices = @transform_0, window_bounds = array<i64: 16, 6>}, {pipeline_mode = #tpu.pipeline_mode<synchronous>, transform_indices = @transform_1, window_bounds = array<i64: 6, 32>}, {pipeline_mode = #tpu.pipeline_mode<synchronous>, transform_indices = @transform_2, window_bounds = array<i64: 1, 32>}, {pipeline_mode = #tpu.pipeline_mode<synchronous>, transform_indices = @transform_3, window_bounds = array<i64: 32, 32>}, {pipeline_mode = #tpu.pipeline_mode<synchronous>, transform_indices = @transform_4, window_bounds = array<i64: 1, 32>}, {pipeline_mode = #tpu.pipeline_mode<synchronous>, transform_indices = @transform_5, window_bounds = array<i64: 32, 4>}, {pipeline_mode = #tpu.pipeline_mode<synchronous>, transform_indices = @transform_6, window_bounds = array<i64: 1, 4>}, {transform_indices = @transform_7, window_bounds = array<i64: 16, 4>}]} {
    %c0 = arith.constant 0 : index
    %c0_0 = arith.constant 0 : index
    %0 = vector.load %arg1[%c0, %c0_0] : memref<16x6xf32, #tpu.memory_space<vmem>>, vector<16x6xf32>
    %1 = arith.truncf %0 : vector<16x6xf32> to vector<16x6xbf16>
    %c0_1 = arith.constant 0 : index
    %c0_2 = arith.constant 0 : index
    %2 = vector.load %arg2[%c0_1, %c0_2] : memref<6x32xbf16, #tpu.memory_space<vmem>>, vector<6x32xbf16>
    %cst = arith.constant dense<0.000000e+00> : vector<16x32xf32>
    %3 = tpu.matmul %1, %2, %cst {dimension_numbers = #tpu.dot_dimension_numbers<[1], [0], [0], [1], [0, 0, 1, 1], [], []>} : vector<16x6xbf16>, vector<6x32xbf16>, vector<16x32xf32> -> vector<16x32xf32>
    %c0_3 = arith.constant 0 : index
    %c0_4 = arith.constant 0 : index
    %4 = vector.load %arg3[%c0_3, %c0_4] : memref<1x32xf32, #tpu.memory_space<vmem>>, vector<1x32xf32>
    %5 = vector.broadcast %4 : vector<1x32xf32> to vector<16x32xf32>
    %6 = arith.addf %3, %5 : vector<16x32xf32>
    %cst_5 = arith.constant 0.000000e+00 : f32
    %7 = vector.broadcast %cst_5 : f32 to vector<16x32xf32>
    %8 = arith.maximumf %6, %7 : vector<16x32xf32>
    %9 = arith.truncf %8 : vector<16x32xf32> to vector<16x32xbf16>
    %c0_6 = arith.constant 0 : index
    %c0_7 = arith.constant 0 : index
    %10 = vector.load %arg4[%c0_6, %c0_7] : memref<32x32xbf16, #tpu.memory_space<vmem>>, vector<32x32xbf16>
    %cst_8 = arith.constant dense<0.000000e+00> : vector<16x32xf32>
    %11 = tpu.matmul %9, %10, %cst_8 {dimension_numbers = #tpu.dot_dimension_numbers<[1], [0], [0], [1], [0, 0, 1, 1], [], []>} : vector<16x32xbf16>, vector<32x32xbf16>, vector<16x32xf32> -> vector<16x32xf32>
    %c0_9 = arith.constant 0 : index
    %c0_10 = arith.constant 0 : index
    %12 = vector.load %arg5[%c0_9, %c0_10] : memref<1x32xf32, #tpu.memory_space<vmem>>, vector<1x32xf32>
    %13 = vector.broadcast %12 : vector<1x32xf32> to vector<16x32xf32>
    %14 = arith.addf %11, %13 : vector<16x32xf32>
    %cst_11 = arith.constant 0.000000e+00 : f32
    %15 = vector.broadcast %cst_11 : f32 to vector<16x32xf32>
    %16 = arith.maximumf %14, %15 : vector<16x32xf32>
    %17 = arith.truncf %16 : vector<16x32xf32> to vector<16x32xbf16>
    %c0_12 = arith.constant 0 : index
    %c0_13 = arith.constant 0 : index
    %18 = vector.load %arg6[%c0_12, %c0_13] : memref<32x4xbf16, #tpu.memory_space<vmem>>, vector<32x4xbf16>
    %cst_14 = arith.constant dense<0.000000e+00> : vector<16x4xf32>
    %19 = tpu.matmul %17, %18, %cst_14 {dimension_numbers = #tpu.dot_dimension_numbers<[1], [0], [0], [1], [0, 0, 1, 1], [], []>} : vector<16x32xbf16>, vector<32x4xbf16>, vector<16x4xf32> -> vector<16x4xf32>
    %c0_15 = arith.constant 0 : index
    %c0_16 = arith.constant 0 : index
    %20 = vector.load %arg7[%c0_15, %c0_16] : memref<1x4xf32, #tpu.memory_space<vmem>>, vector<1x4xf32>
    %21 = vector.broadcast %20 : vector<1x4xf32> to vector<16x4xf32>
    %22 = arith.addf %19, %21 : vector<16x4xf32>
    %c0_17 = arith.constant 0 : index
    %c0_18 = arith.constant 0 : index
    %23 = vector.load %arg8[%c0_17, %c0_18] : memref<16x4xf32, #tpu.memory_space<vmem>>, vector<16x4xf32>
    tpu.vector_store %arg8[%c0_17, %c0_18], %22 {strides = array<i32>} : memref<16x4xf32, #tpu.memory_space<vmem>>, vector<16x4xf32>,
    return
  }
  func.func @transform_0(%arg0: i32) -> (i32, i32) {
    %c0_i32 = arith.constant 0 : i32
    %c0_i32_0 = arith.constant 0 : i32
    return %arg0, %c0_i32 : i32, i32
  }
  func.func @transform_1(%arg0: i32) -> (i32, i32) {
    %c0_i32 = arith.constant 0 : i32
    %c0_i32_0 = arith.constant 0 : i32
    %c0_i32_1 = arith.constant 0 : i32
    return %c0_i32, %c0_i32_0 : i32, i32
  }
  func.func @transform_2(%arg0: i32) -> (i32, i32) {
    %c0_i32 = arith.constant 0 : i32
    %c0_i32_0 = arith.constant 0 : i32
    %c0_i32_1 = arith.constant 0 : i32
    return %c0_i32, %c0_i32_0 : i32, i32
  }
  func.func @transform_3(%arg0: i32) -> (i32, i32) {
    %c0_i32 = arith.constant 0 : i32
    %c0_i32_0 = arith.constant 0 : i32
    %c0_i32_1 = arith.constant 0 : i32
    return %c0_i32, %c0_i32_0 : i32, i32
  }
  func.func @transform_4(%arg0: i32) -> (i32, i32) {
    %c0_i32 = arith.constant 0 : i32
    %c0_i32_0 = arith.constant 0 : i32
    %c0_i32_1 = arith.constant 0 : i32
    return %c0_i32, %c0_i32_0 : i32, i32
  }
  func.func @transform_5(%arg0: i32) -> (i32, i32) {
    %c0_i32 = arith.constant 0 : i32
    %c0_i32_0 = arith.constant 0 : i32
    %c0_i32_1 = arith.constant 0 : i32
    return %c0_i32, %c0_i32_0 : i32, i32
  }
  func.func @transform_6(%arg0: i32) -> (i32, i32) {
    %c0_i32 = arith.constant 0 : i32
    %c0_i32_0 = arith.constant 0 : i32
    %c0_i32_1 = arith.constant 0 : i32
    return %c0_i32, %c0_i32_0 : i32, i32
  }
  func.func @transform_7(%arg0: i32) -> (i32, i32) {
    %c0_i32 = arith.constant 0 : i32
    %c0_i32_0 = arith.constant 0 : i32
    return %arg0, %c0_i32 : i32, i32
  }
}

</mosaic_0001>

<bundles_post_ra>
// kernel: tpu_custom_call.1
= control target key start
LH: loop header
LB: loop body
LE: loop exit
PB: predicated region body
PF: predicated region fallthrough
CT: control target
= control target key end

     0   :  { %vm42_vm0 = vcmask 1042432   ;;  %v281_v0 = vmov 0.0   ;;  %vm282_vm1 = vmmov 0   ;;  %vm38_vm2 = vcmask 48128   ;;  %s361_s1 = inlined_call_operand.vmem [shape: bf16[6,32], index: 1, kind: input, shape index: {}]   ;;  %s362_s0 = inlined_call_operand.vmem [shape: f32[16,6], index: 0, kind: input, shape index: {}]   ;;  %s363_s3 = inlined_call_operand.vmem [shape: bf16[32,32], index: 3, kind: input, shape index: {}]   ;;  %s364_s2 = inlined_call_operand.vmem [shape: f32[1,32], index: 2, kind: input, shape index: {}]   ;;  %s365_s5 = inlined_call_operand.vmem [shape: bf16[32,4], index: 5, kind: input, shape index: {}]   ;;  %s366_s4 = inlined_call_operand.vmem [shape: f32[1,32], index: 4, kind: input, shape index: {}]   ;;  %s367_s6 = inlined_call_operand.vmem [shape: f32[1,4], index: 6, kind: input, shape index: {}]   ;;  %s368_s7 = inlined_call_operand.vmem [shape: f32[16,4], index: 7, kind: output, shape index: {}]  }
   0x1   :  { %253 = vmatprep.subr.bf16.mxu0 %v281_v0  ;;  %v30_v1 = vld [vmem:[%s361_s1] sm:$0x7]  ;;  %255 = vmatprep.mubr.msk.bf16.mxu0 %vm282_vm1, %v281_v0  ;;  %v28_v3 = vld [vmem:[%s362_s0 + $0x8] sm:$0xff]  ;;  %vm113_vm3 = vcmask 261120   ;;  %vm228_vm4 = vcmask 31744  }
   0x2   :  { %v27_v2 = vld [vmem:[%s362_s0] sm:$0xff]  ;;  %v44_v4 = vsel %vm42_vm0, %v30_v1, 0  ;;  %259 = vmatprep.subr.bf16.mxu1 %v281_v0  ;;  %263 = vmatprep.mubr.msk.bf16.mxu1 %vm282_vm1, %v281_v0  ;;  %v278_v7 = vld [vmem:[%s363_s3 + $0x8] sm:$0xff]  }
   0x3   :  { %v29_v5 = vpack.c.bf16 %v28_v3, %v27_v2  ;;  %254 = vmatpush3.bf16.msra.mxu0 %v44_v4  ;;  %v277_v6 = vld [vmem:[%s363_s3] sm:$0xff]   ;;  %v280_v19 = vld [vmem:[%s365_s5 + $0x8] sm:$0xff]  }
   0x4   :  { %267 = vmatprep.subr.bf16.mxu0 %v281_v0  ;;  %260 = vmatpush3.bf16.msra.mxu1 %v277_v6  ;;  %v235_v8 = vld [vmem:[%s364_s2] ss:$0 sm:$0xff] }
   0x5   :  { %261 = vmatprep.subr.bf16.mxu1 %v281_v0  ;;  %v279_v18 = vld [vmem:[%s365_s5] sm:$0xff]  }
   0x6   :  { %256 = vmatmul.mubr.msk.bf16.vlgmr.msra.gmra.mrb[0].mxu0 %vm38_vm2, %v29_v5  ;;  %v237_v20 = vld [vmem:[%s366_s4] ss:$0 sm:$0xff] }
   0x7   :  { %271 = vmatprep.mubr.msk.bf16.mxu0 %vm282_vm1, %v281_v0  ;;  %268 = vmatpush3.bf16.msra.mxu0 %v279_v18  ;;  %v241_v30 = vld [vmem:[%s367_s6] ss:$0 sm:$0xff] }
   0x8   :  { %262 = vmatpush3.bf16.msra.mxu1 %v278_v7  ;;  %269 = vmatprep.subr.bf16.mxu0 %v281_v0 }
   0xb   :  { %270 = vmatpush3.bf16.msra.mxu0 %v280_v19 }
  0xd9   :  { %v80_v9 = vpop.f32.mrb[0].mxu0 }
  0xda   :  { %v81_v10 = vadd.f32 %v235_v8, %v80_v9  ;;  %v257_v11 = vpop.f32.mrb[1].mxu0 }
  0xdb   :  { %v83_v12 = vpop.f32.mrb[2].mxu0 }
  0xdc   :  { %v84_v13 = vadd.f32 %v235_v8, %v83_v12  ;;  %v258_v14 = vpop.f32.mrb[3].mxu0  ;;  %v87_v15 = vmax.f32 %v81_v10, 0.0 }
  0xde   :  { %v88_v16 = vmax.f32 %v84_v13, 0.0 }
  0xe0   :  { %v89_v17 = vpack.c.bf16 %v88_v16, %v87_v15 }
  0xe2   :  { %264 = vmatmul.mubr.msk.bf16.vlgmr.msra.gmra.mrb[0].mxu1 %vm113_vm3, %v89_v17 }
 0x1b5   :  { %v151_v21 = vpop.f32.mrb[0].mxu1 }
 0x1b6   :  { %v152_v22 = vadd.f32 %v237_v20, %v151_v21  ;;  %v265_v23 = vpop.f32.mrb[1].mxu1 }
 0x1b7   :  { %v154_v24 = vpop.f32.mrb[2].mxu1 }
 0x1b8   :  { %v155_v25 = vadd.f32 %v237_v20, %v154_v24  ;;  %v266_v26 = vpop.f32.mrb[3].mxu1  ;;  %v158_v27 = vmax.f32 %v152_v22, 0.0 }
 0x1ba   :  { %v159_v28 = vmax.f32 %v155_v25, 0.0 }
 0x1bc   :  { %v160_v29 = vpack.c.bf16 %v159_v28, %v158_v27 }
 0x1be   :  { %272 = vmatmul.mubr.msk.bf16.vlgmr.msra.gmra.mrb[4].mxu0 %vm113_vm3, %v160_v29 }
 0x291   :  { %v221_v31 = vpop.f32.mrb[4].mxu0 }
 0x292   :  { %v222_v32 = vadd.f32 %v241_v30, %v221_v31  ;;  %v273_v33 = vpop.f32.mrb[5].mxu0 }
 0x293   :  { %v224_v34 = vpop.f32.mrb[6].mxu0 }
 0x294   :  { %229 = vst.msk [vmem:[%s368_s7] sm:$0xff] %vm228_vm4, %v222_v32  ;;  %v225_v35 = vadd.f32 %v241_v30, %v224_v34  ;;  %v274_v36 = vpop.f32.mrb[7].mxu0 }
 0x296   :  { %230 = vst.msk [vmem:[%s368_s7 + $0x8] sm:$0xff] %vm228_vm4, %v225_v35 }

</bundles_post_ra>
